<compile_context>
chip_gen: v7x
topology: tpu7x:2x2x1
jax: 0.10.0
libtpu: 0.0.40
codegen_flags: <defaults>
</compile_context>

<pallas_src>
import functools

import jax
import jax.numpy as jnp
from jax.experimental import pallas as pl
from jax.experimental.pallas import tpu as pltpu


def _stats_kernel(x_ref, sum_ref, sumsq_ref):
    # x_ref: (1, tc, thw).  sum_ref / sumsq_ref: (tc, 1) f32, VMEM-resident
    # across the two reduction grid axes (block index depends only on the
    # channel-tile axis), written back to HBM only when the C tile changes.
    b = pl.program_id(1)
    h = pl.program_id(2)

    @pl.when(jnp.logical_and(b == 0, h == 0))
    def _():
        sum_ref[...] = jnp.zeros_like(sum_ref)
        sumsq_ref[...] = jnp.zeros_like(sumsq_ref)

    x = x_ref[0]
    if x.dtype != jnp.float32:
        x = x.astype(jnp.float32)
    sum_ref[...] += jnp.sum(x, axis=1, keepdims=True)
    sumsq_ref[...] += jnp.sum(x * x, axis=1, keepdims=True)


def _norm_kernel(scale_ref, shift_ref, x_ref, o_ref):
    # Single FMA per element: x * scale + shift, with (tc, 1) scale/shift
    # broadcast along lanes.
    x = x_ref[0]
    if x.dtype != jnp.float32:
        x = x.astype(jnp.float32)
    o_ref[0] = (x * scale_ref[...] + shift_ref[...]).astype(o_ref.dtype)


def _pick_tile(dim, target, align):
    """Largest multiple of `align` that evenly divides `dim` and is <= target;
    falls back to the full extent (always a legal block shape)."""
    if dim <= target or dim % align != 0:
        return dim
    t = (target // align) * align
    while t >= align:
        if dim % t == 0:
            return t
        t -= align
    return dim


@functools.partial(jax.jit, static_argnames=("eps", "momentum"))
def batch_norm_pallas(x, gamma, beta, exp_mean, exp_var, eps=1e-5, momentum=0.1):
    """Forward of the PyTorch BatchNorm module (affine=True,
    track_running_stats=True, training mode).

    x: (B, C, *spatial).  Returns (x_hat, new_exp_mean, new_exp_var); the
    PyTorch forward returns only x_hat, the running stats are buffer updates.
    """
    x_shape = x.shape
    B, C = x_shape[0], x_shape[1]
    HW = 1
    for d in x_shape[2:]:
        HW *= d
    x3 = x.reshape(B, C, HW)  # free contiguous reshape, no transpose

    # Tile sizes: 256 x 2048 f32 = 2 MiB per tile; with double buffering of
    # input + output this stays well under the scoped-VMEM limit on all of
    # v5e / v6e / v7x.
    tc = _pick_tile(C, 256, 8)
    thw = _pick_tile(HW, 2048, 128)
    nc = C // tc
    nhw = HW // thw

    vmem_limit = 32 * 1024 * 1024

    # ---- Pass 1: per-channel sum and sum of squares (accumulator pattern).
    xsum, xsumsq = pl.pallas_call(
        _stats_kernel,
        out_shape=(
            jax.ShapeDtypeStruct((C, 1), jnp.float32),
            jax.ShapeDtypeStruct((C, 1), jnp.float32),
        ),
        grid_spec=pltpu.PrefetchScalarGridSpec(
            num_scalar_prefetch=0,
            grid=(nc, B, nhw),  # reduction axes (B, HW) last
            in_specs=[
                pl.BlockSpec((1, tc, thw), lambda ci, bi, hi: (bi, ci, hi)),
            ],
            out_specs=[
                pl.BlockSpec((tc, 1), lambda ci, bi, hi: (ci, 0)),
                pl.BlockSpec((tc, 1), lambda ci, bi, hi: (ci, 0)),
            ],
        ),
        compiler_params=pltpu.CompilerParams(
            dimension_semantics=("parallel", "arbitrary", "arbitrary"),
            vmem_limit_bytes=vmem_limit,
        ),
    )(x3)

    # ---- O(C) glue: batch statistics, fused per-channel scale/shift, and the
    # running-stat buffer updates.  Matches the module's math (biased
    # variance used for both normalization and the running-var update).
    count = float(B * HW)
    mean = xsum[:, 0] / count
    var = xsumsq[:, 0] / count - mean * mean
    # Guard against tiny negative variance from E[x^2] - E[x]^2 cancellation.
    inv_std = jax.lax.rsqrt(jnp.maximum(var, 0.0) + eps)
    scale = gamma.astype(jnp.float32) * inv_std
    shift = beta.astype(jnp.float32) - mean * scale

    # ---- Pass 2: x_hat = x * scale + shift, streamed in native layout.
    x_hat3 = pl.pallas_call(
        _norm_kernel,
        out_shape=jax.ShapeDtypeStruct((B, C, HW), x.dtype),
        grid_spec=pltpu.PrefetchScalarGridSpec(
            num_scalar_prefetch=0,
            grid=(nc, B, nhw),
            in_specs=[
                pl.BlockSpec((tc, 1), lambda ci, bi, hi: (ci, 0)),
                pl.BlockSpec((tc, 1), lambda ci, bi, hi: (ci, 0)),
                pl.BlockSpec((1, tc, thw), lambda ci, bi, hi: (bi, ci, hi)),
            ],
            out_specs=pl.BlockSpec((1, tc, thw), lambda ci, bi, hi: (bi, ci, hi)),
        ),
        compiler_params=pltpu.CompilerParams(
            dimension_semantics=("parallel", "parallel", "parallel"),
            vmem_limit_bytes=vmem_limit,
        ),
    )(scale.reshape(C, 1), shift.reshape(C, 1), x3)

    x_hat = x_hat3.reshape(x_shape)  # free reshape back to the input shape

    new_exp_mean = (1.0 - momentum) * exp_mean + momentum * mean
    new_exp_var = (1.0 - momentum) * exp_var + momentum * var
    return x_hat, new_exp_mean, new_exp_var


if __name__ == "__main__":
    B, C, H, W = 2, 4, 16, 16
    eps, momentum = 1e-5, 0.1

    key = jax.random.PRNGKey(0)
    x = jax.random.normal(key, (B, C, H, W), dtype=jnp.float32)

    # deterministic parameter / buffer init, same as the module __init__
    gamma = jnp.ones((C,), jnp.float32)
    beta = jnp.zeros((C,), jnp.float32)
    exp_mean = jnp.zeros((C,), jnp.float32)
    exp_var = jnp.ones((C,), jnp.float32)

    x_hat, new_exp_mean, new_exp_var = batch_norm_pallas(
        x, gamma, beta, exp_mean, exp_var, eps=eps, momentum=momentum)
    jax.block_until_ready((x_hat, new_exp_mean, new_exp_var))

    # pure-JAX reference (mirrors the PyTorch forward exactly)
    xr = x.reshape(B, C, -1)
    mean_ref = xr.mean(axis=(0, 2))
    var_ref = (xr ** 2).mean(axis=(0, 2)) - mean_ref ** 2
    xh_ref = (xr - mean_ref.reshape(1, -1, 1)) / jnp.sqrt(var_ref + eps).reshape(1, -1, 1)
    xh_ref = (gamma.reshape(1, -1, 1) * xh_ref + beta.reshape(1, -1, 1)).reshape(B, C, H, W)
    em_ref = (1 - momentum) * exp_mean + momentum * mean_ref
    ev_ref = (1 - momentum) * exp_var + momentum * var_ref

    assert jnp.allclose(x_hat, xh_ref, atol=1e-5, rtol=1e-5)
    assert jnp.allclose(new_exp_mean, em_ref, atol=1e-5, rtol=1e-5)
    assert jnp.allclose(new_exp_var, ev_ref, atol=1e-5, rtol=1e-5)
    print("KERNEL_OK")
</pallas_src>

<mosaic_0001>
module attributes {stable_mosaic.version = 11 : i64} {
  func.func @_stats_kernel(%arg0: i32, %arg1: i32, %arg2: i32, %arg3: memref<1x4x256xf32, #tpu.memory_space<vmem>>, %arg4: memref<4x1xf32, #tpu.memory_space<vmem>>, %arg5: memref<4x1xf32, #tpu.memory_space<vmem>>) attributes {dimension_semantics = [#tpu.dimension_semantics<parallel>, #tpu.dimension_semantics<arbitrary>, #tpu.dimension_semantics<arbitrary>], iteration_bounds = array<i64: 1, 2, 1>, scalar_prefetch = 0 : i64, scratch_operands = 0 : i64, tpu.core_type = #tpu.core_type<tc>, window_params = [{transform_indices = @transform_0, window_bounds = array<i64: 1, 4, 256>}, {transform_indices = @transform_1, window_bounds = array<i64: 4, 1>}, {transform_indices = @transform_2, window_bounds = array<i64: 4, 1>}]} {
    %c0_i32 = arith.constant 0 : i32
    %0 = arith.cmpi eq, %arg1, %c0_i32 : i32
    %c0_i32_0 = arith.constant 0 : i32
    %1 = arith.cmpi eq, %arg2, %c0_i32_0 : i32
    %2 = arith.andi %0, %1 : i1
    %3 = arith.extui %2 : i1 to i32
    %c0_i32_1 = arith.constant 0 : i32
    %4 = arith.cmpi ne, %3, %c0_i32_1 : i32
    scf.if %4 {
      %cst_13 = arith.constant 0.000000e+00 : f32
      %18 = vector.broadcast %cst_13 : f32 to vector<4x1xf32>
      %c0_14 = arith.constant 0 : index
      %c0_15 = arith.constant 0 : index
      %19 = vector.load %arg4[%c0_14, %c0_15] : memref<4x1xf32, #tpu.memory_space<vmem>>, vector<4x1xf32>
      tpu.vector_store %arg4[%c0_14, %c0_15], %18 {strides = array<i32>} : memref<4x1xf32, #tpu.memory_space<vmem>>, vector<4x1xf32>,
      %cst_16 = arith.constant 0.000000e+00 : f32
      %20 = vector.broadcast %cst_16 : f32 to vector<4x1xf32>
      %c0_17 = arith.constant 0 : index
      %c0_18 = arith.constant 0 : index
      %21 = vector.load %arg5[%c0_17, %c0_18] : memref<4x1xf32, #tpu.memory_space<vmem>>, vector<4x1xf32>
      tpu.vector_store %arg5[%c0_17, %c0_18], %20 {strides = array<i32>} : memref<4x1xf32, #tpu.memory_space<vmem>>, vector<4x1xf32>,
    } else {
    }
    %c0 = arith.constant 0 : index
    %c0_2 = arith.constant 0 : index
    %c0_3 = arith.constant 0 : index
    %5 = vector.load %arg3[%c0, %c0_2, %c0_3] : memref<1x4x256xf32, #tpu.memory_space<vmem>>, vector<1x4x256xf32>
    %6 = vector.shape_cast %5 : vector<1x4x256xf32> to vector<4x256xf32>
    %c0_4 = arith.constant 0 : index
    %c0_5 = arith.constant 0 : index
    %7 = vector.load %arg4[%c0_4, %c0_5] : memref<4x1xf32, #tpu.memory_space<vmem>>, vector<4x1xf32>
    %cst = arith.constant dense<0.000000e+00> : vector<4xf32>
    %8 = vector.multi_reduction <add>, %6, %cst [1] : vector<4x256xf32> to vector<4xf32>
    %9 = vector.shape_cast %8 : vector<4xf32> to vector<4x1xf32>
    %10 = arith.addf %7, %9 : vector<4x1xf32>
    %c0_6 = arith.constant 0 : index
    %c0_7 = arith.constant 0 : index
    %11 = vector.load %arg4[%c0_6, %c0_7] : memref<4x1xf32, #tpu.memory_space<vmem>>, vector<4x1xf32>
    tpu.vector_store %arg4[%c0_6, %c0_7], %10 {strides = array<i32>} : memref<4x1xf32, #tpu.memory_space<vmem>>, vector<4x1xf32>,
    %c0_8 = arith.constant 0 : index
    %c0_9 = arith.constant 0 : index
    %12 = vector.load %arg5[%c0_8, %c0_9] : memref<4x1xf32, #tpu.memory_space<vmem>>, vector<4x1xf32>
    %13 = arith.mulf %6, %6 : vector<4x256xf32>
    %cst_10 = arith.constant dense<0.000000e+00> : vector<4xf32>
    %14 = vector.multi_reduction <add>, %13, %cst_10 [1] : vector<4x256xf32> to vector<4xf32>
    %15 = vector.shape_cast %14 : vector<4xf32> to vector<4x1xf32>
    %16 = arith.addf %12, %15 : vector<4x1xf32>
    %c0_11 = arith.constant 0 : index
    %c0_12 = arith.constant 0 : index
    %17 = vector.load %arg5[%c0_11, %c0_12] : memref<4x1xf32, #tpu.memory_space<vmem>>, vector<4x1xf32>
    tpu.vector_store %arg5[%c0_11, %c0_12], %16 {strides = array<i32>} : memref<4x1xf32, #tpu.memory_space<vmem>>, vector<4x1xf32>,
    return
  }
  func.func @transform_0(%arg0: i32, %arg1: i32, %arg2: i32) -> (i32, i32, i32) {
    %c0_i32 = arith.constant 0 : i32
    return %arg1, %arg0, %arg2 : i32, i32, i32
  }
  func.func @transform_1(%arg0: i32, %arg1: i32, %arg2: i32) -> (i32, i32) {
    %c0_i32 = arith.constant 0 : i32
    %c0_i32_0 = arith.constant 0 : i32
    return %arg0, %c0_i32 : i32, i32
  }
  func.func @transform_2(%arg0: i32, %arg1: i32, %arg2: i32) -> (i32, i32) {
    %c0_i32 = arith.constant 0 : i32
    %c0_i32_0 = arith.constant 0 : i32
    return %arg0, %c0_i32 : i32, i32
  }
}

module attributes {stable_mosaic.version = 11 : i64} {
  func.func @_norm_kernel(%arg0: i32, %arg1: i32, %arg2: i32, %arg3: memref<4x1xf32, #tpu.memory_space<vmem>>, %arg4: memref<4x1xf32, #tpu.memory_space<vmem>>, %arg5: memref<1x4x256xf32, #tpu.memory_space<vmem>>, %arg6: memref<1x4x256xf32, #tpu.memory_space<vmem>>) attributes {dimension_semantics = [#tpu.dimension_semantics<parallel>, #tpu.dimension_semantics<parallel>, #tpu.dimension_semantics<parallel>], iteration_bounds = array<i64: 1, 2, 1>, scalar_prefetch = 0 : i64, scratch_operands = 0 : i64, tpu.core_type = #tpu.core_type<tc>, window_params = [{transform_indices = @transform_0, window_bounds = array<i64: 4, 1>}, {transform_indices = @transform_1, window_bounds = array<i64: 4, 1>}, {transform_indices = @transform_2, window_bounds = array<i64: 1, 4, 256>}, {transform_indices = @transform_3, window_bounds = array<i64: 1, 4, 256>}]} {
    %c0 = arith.constant 0 : index
    %c0_0 = arith.constant 0 : index
    %c0_1 = arith.constant 0 : index
    %0 = vector.load %arg5[%c0, %c0_0, %c0_1] : memref<1x4x256xf32, #tpu.memory_space<vmem>>, vector<1x4x256xf32>
    %1 = vector.shape_cast %0 : vector<1x4x256xf32> to vector<4x256xf32>
    %c0_2 = arith.constant 0 : index
    %c0_3 = arith.constant 0 : index
    %2 = vector.load %arg3[%c0_2, %c0_3] : memref<4x1xf32, #tpu.memory_space<vmem>>, vector<4x1xf32>
    %3 = vector.broadcast %2 : vector<4x1xf32> to vector<4x256xf32>
    %4 = arith.mulf %1, %3 : vector<4x256xf32>
    %c0_4 = arith.constant 0 : index
    %c0_5 = arith.constant 0 : index
    %5 = vector.load %arg4[%c0_4, %c0_5] : memref<4x1xf32, #tpu.memory_space<vmem>>, vector<4x1xf32>
    %6 = vector.broadcast %5 : vector<4x1xf32> to vector<4x256xf32>
    %7 = arith.addf %4, %6 : vector<4x256xf32>
    %c0_6 = arith.constant 0 : index
    %c0_7 = arith.constant 0 : index
    %c0_8 = arith.constant 0 : index
    %8 = vector.load %arg6[%c0_6, %c0_7, %c0_8] : memref<1x4x256xf32, #tpu.memory_space<vmem>>, vector<1x4x256xf32>
    %9 = vector.shape_cast %8 : vector<1x4x256xf32> to vector<4x256xf32>
    %10 = vector.shape_cast %7 : vector<4x256xf32> to vector<1x4x256xf32>
    tpu.vector_store %arg6[%c0_6, %c0_7, %c0_8], %10 {strides = array<i32>} : memref<1x4x256xf32, #tpu.memory_space<vmem>>, vector<1x4x256xf32>,
    return
  }
  func.func @transform_0(%arg0: i32, %arg1: i32, %arg2: i32) -> (i32, i32) {
    %c0_i32 = arith.constant 0 : i32
    %c0_i32_0 = arith.constant 0 : i32
    return %arg0, %c0_i32 : i32, i32
  }
  func.func @transform_1(%arg0: i32, %arg1: i32, %arg2: i32) -> (i32, i32) {
    %c0_i32 = arith.constant 0 : i32
    %c0_i32_0 = arith.constant 0 : i32
    return %arg0, %c0_i32 : i32, i32
  }
  func.func @transform_2(%arg0: i32, %arg1: i32, %arg2: i32) -> (i32, i32, i32) {
    %c0_i32 = arith.constant 0 : i32
    return %arg1, %arg0, %arg2 : i32, i32, i32
  }
  func.func @transform_3(%arg0: i32, %arg1: i32, %arg2: i32) -> (i32, i32, i32) {
    %c0_i32 = arith.constant 0 : i32
    return %arg1, %arg0, %arg2 : i32, i32, i32
  }
}

</mosaic_0001>

<bundles_post_ra>
// kernel: batch_norm_pallas.2
= control target key start
LH: loop header
LB: loop body
LE: loop exit
PB: predicated region body
PF: predicated region fallthrough
CT: control target
= control target key end

     0   :  { %s418_s9 = smov 0   ;;  %s420_s10 = smov 0   ;;  %s466_s0 = inlined_call_operand.vmem [shape: f32[2,4,256], index: 0, kind: input, shape index: {}]   ;;  %s467_s1 = inlined_call_operand.vmem [shape: f32[4,1], index: 1, kind: output, shape index: {0}]   ;;  %s468_s2 = inlined_call_operand.vmem [shape: f32[4,1], index: 2, kind: output, shape index: {1}]  }
   0x1   :  { %s422_s11 = smov 0  }
   0x2 LB: > { %s28_s12 = sadd.s32 1, %s396_s10  ;;  %p342_p0 = scmp.ge.s32.totalorder %s400_s11, 1  ;;  %s400_s11 = sphi %s422_s11, %s13_s11   ;;  %s396_s10 = sphi %s420_s10, %s470_s10   ;;  %s392_s9 = sphi %s418_s9, %s469_s9  }
   0x3   : > { %p30_p1 = scmp.ge.s32.totalorder %s28_s12, 2  ;;  %p147_p2 = scmp.lt.s32.totalorder %s400_s11, 3 }
   0x5   : > { %s472_s12 = smov (%p30_p1, %s28_s12), 0  ;;  %p148_p3 = pnand %p342_p0, %p147_p2 }
   0x6   : > { %p181_p4 = scmp.lt.s32.totalorder (!%p148_p3), %s392_s9, 1  ;;  %p202_p5 = scmp.eq.s32.totalorder (!%p148_p3), %s392_s9, 0 }
   0x7   : > { %151 = sbr.rel (%p148_p3) target bundleno = 176 (0xb0), region = 24 }
   0xe   : > { %s474_s9 = smov (!%p181_p4, %s392_s9), 1  ;;  %207 = sbr.rel (!%p202_p5) target bundleno = 21 (0x15), region = 28 }
   0xf   : > { %s350_s13 = sshll.u32 %s474_s9, 3  ;;  %vm208_vm0 = vcmask (%p202_p5), 3072   ;;  %v402_v0 = vmov (%p202_p5), 0.0  }
  0x10   : > { %s192_s16 = scalar_lea.vmem %s466_s0, %s350_s13  ;;  %209 = vst.msk [vmem:[%s467_s1] sm:$0xf] (%p202_p5), %vm208_vm0, %v402_v0  ;;  %210 = vst.msk [vmem:[%s468_s2] sm:$0xf] (%p202_p5), %vm208_vm0, %v402_v0 }
  0x15 PF: > { %v211_v1 = vld [vmem:[%s192_s16] sm:$0xff]  ;;  %vm216_vm1 = vcmask 1043456   ;;  %vm223_vm2 = vcmask 3072  }
  0x16   : > { %v214_v2 = vcombine.high %v211_v1, %v211_v1  ;;  %v217_v3 = vsel %vm216_vm1, %v211_v1, 0.0  ;;  %v226_v4 = vmul.f32 %v211_v1, %v211_v1 }
  0x17   : > { %v212_v11 = vld [vmem:[%s467_s1] sm:$0xf] }
  0x18   : > { %v218_v5 = vsel %vm216_vm1, %v214_v2, 0.0  ;;  %v228_v6 = vcombine.high %v226_v4, %v226_v4  ;;  %v230_v7 = vsel %vm216_vm1, %v226_v4, 0.0  ;;  %v225_v14 = vld [vmem:[%s468_s2] sm:$0xf] }
  0x19   : > { %v219_v8 = vadd.f32 %v218_v5, %v217_v3 }
  0x1a   : > { %v231_v9 = vsel %vm216_vm1, %v228_v6, 0.0 }
  0x1b   : > { %220 = vadd.xlane.f32.xlu0 %v219_v8  ;;  %v232_v10 = vadd.f32 %v231_v9, %v230_v7 }
  0x1f   : > { %233 = vadd.xlane.f32.xlu0 %v232_v10 }
  0xa8   : > { %v221_v12 = vpop.xlane.xlu0 %220 }
  0xa9   : > { %v222_v13 = vadd.f32 %v221_v12, %v212_v11 }
  0xab   : > { %224 = vst.msk [vmem:[%s467_s1] sm:$0xf] %vm223_vm2, %v222_v13 }
  0xac   : > { %v234_v15 = vpop.xlane.xlu0 %233 }
  0xad   : > { %v235_v16 = vadd.f32 %v234_v15, %v225_v14 }
  0xaf   : > { %236 = vst.msk [vmem:[%s468_s2] sm:$0xf] %vm223_vm2, %v235_v16 }
  0xb0 PF: > { %s13_s11 = sadd.s32 1, %s400_s11   ;;  %s469_s9 = smov %s396_s10 }
  0xb1   : > { %p10_p6 = scmp.ge.s32.totalorder %s13_s11, 4   ;;  %s470_s10 = smov %s472_s12 }
  0xb3   :  { %12 = sbr.rel (!%p10_p6) target bundleno = 2 (0x2), region = 70 }

// kernel: batch_norm_pallas.3
= control target key start
LH: loop header
LB: loop body
LE: loop exit
PB: predicated region body
PF: predicated region fallthrough
CT: control target
= control target key end

     0   :  { %s535_s12 = smov 0   ;;  %s537_s13 = smov 0   ;;  %s574_s0 = inlined_call_operand.vmem [shape: f32[4,1], index: 0, kind: input, shape index: {}]   ;;  %s575_s1 = inlined_call_operand.vmem [shape: f32[4,1], index: 1, kind: input, shape index: {}]   ;;  %s576_s2 = inlined_call_operand.vmem [shape: f32[2,4,256], index: 2, kind: input, shape index: {}]   ;;  %s577_s3 = inlined_call_operand.vmem [shape: f32[2,4,256], index: 3, kind: output, shape index: {}]  }
   0x1   :  { %s539_s14 = smov 0  }
   0x2 LB: > { %s28_s15 = sadd.s32 1, %s507_s13  ;;  %p453_p0 = scmp.ge.s32.totalorder %s511_s14, 1  ;;  %s511_s14 = sphi %s539_s14, %s13_s14   ;;  %s507_s13 = sphi %s537_s13, %s579_s13   ;;  %s503_s12 = sphi %s535_s12, %s578_s12  }
   0x3   : > { %p30_p1 = scmp.ge.s32.totalorder %s28_s15, 2  ;;  %p191_p2 = scmp.lt.s32.totalorder %s511_s14, 3 }
   0x5   : > { %s581_s15 = smov (%p30_p1, %s28_s15), 0  ;;  %p192_p3 = pnand %p453_p0, %p191_p2 }
   0x6   : > { %v276_v0 = vld [vmem:[%s574_s0] sm:$0xf] (!%p192_p3)  ;;  %v513_v1 = vmov (!%p192_p3), 0   ;;  %p248_p4 = scmp.lt.s32.totalorder (!%p192_p3), %s503_s12, 1  ;;  %v514_v3 = vmov (!%p192_p3), 839922192   ;;  %v284_v5 = vlaneseq (!%p192_p3) }
   0x7   : > { %195 = sbr.rel (%p192_p3) target bundleno = 145 (0x91), region = 32  ;;  %488 = vset.pattern.permute.xlu0 (!%p192_p3), %v513_v1  ;;  %v290_v2 = vld [vmem:[%s575_s1] sm:$0xf] (!%p192_p3)  ;;  %v282_v4 = vunpack.c.l.s4 (!%p192_p3), %v514_v3 }
   0x8   : > { %279 = vperm.xlu0 (!%p192_p3), %488, %v276_v0   ;;  %v285_v7 = vshrl.u32 (!%p192_p3), %v284_v5, 7 }
   0x9   : > { %v283_v6 = vunpack.c.0.s8 (!%p192_p3), %v282_v4 }
   0xb   : > { %v286_v8 = vsub.s32 (!%p192_p3), %v283_v6, %v285_v7 }
   0xc   : > { %293 = vperm.xlu0 (!%p192_p3), %488, %v290_v2  }
   0xe   : > { %s583_s12 = smov (!%p248_p4, %s503_s12), 1 }
   0xf   : > { %s460_s20 = sshll.u32 %s583_s12, 3 }
  0x10   : > { %s259_s23 = scalar_lea.vmem %s576_s2, %s460_s20  ;;  %s273_s26 = scalar_lea.vmem %s577_s3, %s460_s20 }
  0x11   : > { %v275_v11 = vld [vmem:[%s259_s23] sm:$0xff] }
  0x87   : > { %v280_v9 = vpop.permute.xlu0 %279 }
  0x88   : > { %v287_v10 = vrot.slane %v280_v9, %v286_v8 }
  0x8a   : > { %v289_v13 = vmul.f32 %v287_v10, %v275_v11 }
  0x8b   : > { %v294_v12 = vpop.permute.xlu0 %293 }
  0x8c   : > { %v301_v14 = vrot.slane %v294_v12, %v286_v8 }
  0x8e   : > { %v303_v15 = vadd.f32 %v301_v14, %v289_v13 }
  0x90   : > { %304 = vst [vmem:[%s273_s26] sm:$0xff] %v303_v15 }
  0x91 PF: > { %s13_s14 = sadd.s32 1, %s511_s14   ;;  %s578_s12 = smov %s507_s13 }
  0x92   : > { %p10_p5 = scmp.ge.s32.totalorder %s13_s14, 4   ;;  %s579_s13 = smov %s581_s15 }
  0x94   :  { %12 = sbr.rel (!%p10_p5) target bundleno = 2 (0x2), region = 68 }

</bundles_post_ra>
